<compile_context>
chip_gen: v5e
topology: v5e:2x2
jax: 0.10.0
libtpu: 0.0.40
codegen_flags: <defaults>
</compile_context>

<pallas_src>
import jax
import jax.numpy as jnp
from jax import lax
from jax.experimental import pallas as pl
from jax.experimental.pallas import tpu as pltpu


SUPPORT_OPERATORS = ['Uint8ToFloat', 'Identity', 'Brightness', 'Contrast', 'Saturation',
                     'Hue', 'Sharpness', 'Posterize', 'Solarize', 'AutoContrast',
                     'Equalize', 'Invert', 'GaussianBlur', 'GaussianNoise', 'Lighting',
                     'CVUint8ToFloat', 'CVIdentity', 'CVBrightness', 'CVContrast',
                     'CVSaturation', 'CVHue', 'CVSharpness', 'CVPosterize', 'CVSolarize',
                     'CVAutoContrast', 'CVEqualize', 'CVInvert', 'CVGaussianBlur',
                     'CVGaussianNoise', 'CVLighting', 'ShearX', 'ShearY', 'TranslateX',
                     'TranslateY', 'CropX', 'CropY', 'Fliplr', 'Flipud', 'Rotate',
                     'Resize', 'ResizeWidth', 'ImagePadding', 'ImageHeightPaddingOrCrop',
                     'Scale', 'CVShearX', 'CVShearY', 'CVTranslateX', 'CVTranslateY',
                     'CVCropX', 'CVCropY', 'CVFliplr', 'CVFlipud', 'CVRotate', 'CVResize',
                     'CVResizeWidth', 'CVImagePadding', 'CVScale']

LANE = 128
_MAX_TILE = 512 * LANE          # elements/channel per grid step (~768 KiB f32 per (3, TILE) block)

_SMEM = pl.BlockSpec(memory_space=pltpu.MemorySpace.SMEM)
_VMEM = pl.BlockSpec(memory_space=pltpu.MemorySpace.VMEM)


# ----------------------- layout helpers: CHW -> lane-dense (C, P) -----------------------

def _slab_geometry(h, w):
    """Padded slab width P (multiple of LANE) and lane-tile size (divides P)."""
    hw = h * w
    p = pl.cdiv(hw, LANE) * LANE
    if p <= _MAX_TILE:
        tile = p
    else:
        tile = _MAX_TILE
        p = pl.cdiv(p, tile) * tile
    return p, tile


def _to_slab(image, p):
    c, h, w = image.shape
    flat = image.reshape(c, h * w)          # metadata-only reshape
    if p > h * w:
        flat = jnp.pad(flat, ((0, 0), (0, p - h * w)))
    return flat


def _from_slab(slab, shape):
    c, h, w = shape
    return slab[:, :h * w].reshape(c, h, w)


def _scalar(v):
    return jnp.asarray(v, jnp.float32).reshape(1)


# ------------------------------- Pallas kernels (hot path) -------------------------------

def _invert_kernel(x_ref, o_ref):
    o_ref[...] = 1.0 - x_ref[...]


def _brightness_kernel(mag_ref, x_ref, o_ref):
    o_ref[...] = jnp.clip(x_ref[...] * (1.0 + mag_ref[0]), 0.0, 1.0)


def _solarize_kernel(thr_ref, x_ref, o_ref):
    x = x_ref[...]
    o_ref[...] = jnp.where(x >= thr_ref[0], 1.0 - x, x)


def _saturation_kernel(mag_ref, x_ref, o_ref):
    x = x_ref[...]                                            # (C, TILE), RGB
    gray = (0.299 * x[0] + 0.587 * x[1] + 0.114 * x[2])[None, :]
    o_ref[...] = jnp.clip(gray + (x - gray) * (1.0 + mag_ref[0]), 0.0, 1.0)


def _gray_sum_kernel(x_ref, o_ref):
    # Tiled grid reduction: accumulate the grayscale sum into a resident (1,1) block.
    @pl.when(pl.program_id(0) == 0)
    def _init():
        o_ref[...] = jnp.zeros_like(o_ref)
    x = x_ref[...]                                            # (C, TILE); pad is zeros
    gray = 0.299 * x[0] + 0.587 * x[1] + 0.114 * x[2]
    o_ref[...] = o_ref[...] + jnp.sum(gray)


def _contrast_kernel(mag_ref, mean_ref, x_ref, o_ref):
    mean = mean_ref[0]
    o_ref[...] = jnp.clip(mean + (x_ref[...] - mean) * (1.0 + mag_ref[0]), 0.0, 1.0)


def _make_contrast_fused_kernel(inv_hw):
    """Single-pass contrast: gray-mean reduction + rescale fused in one kernel."""
    def kernel(mag_ref, x_ref, o_ref):
        x = x_ref[...]                                        # (C, P); pad is zeros
        gray = 0.299 * x[0] + 0.587 * x[1] + 0.114 * x[2]
        mean = jnp.sum(gray) * inv_hw
        o_ref[...] = jnp.clip(mean + (x - mean) * (1.0 + mag_ref[0]), 0.0, 1.0)
    return kernel


def _add_noise_kernel(std_ref, x_ref, n_ref, o_ref):
    o_ref[...] = jnp.clip(x_ref[...] + std_ref[0] * n_ref[...], 0.0, 1.0)


def _make_sharpness_kernel(w):
    """3x3 smoothing kernel [[1,1,1],[1,5,1],[1,1,1]]/13 on the flattened slab.

    Interior pixels are exact (shifts never wrap for them); border / padded
    pixels are overwritten with the original via the interior mask — matching
    torchvision adjust_sharpness semantics.
    """
    offsets = [dy * w + dx
               for dy in (-1, 0, 1) for dx in (-1, 0, 1)
               if not (dy == 0 and dx == 0)]

    def kernel(mag_ref, x_ref, mask_ref, o_ref):
        x = x_ref[...]                                        # (C, P)
        acc = 5.0 * x
        for off in offsets:
            acc = acc + jnp.roll(x, -off, axis=1)             # lowers to XLU lane rotate
        blurred = jnp.clip(acc * (1.0 / 13.0), 0.0, 1.0)
        factor = 1.0 + mag_ref[0]
        blended = jnp.clip(blurred + factor * (x - blurred), 0.0, 1.0)
        o_ref[...] = jnp.where(mask_ref[...] > 0.5, blended, x)

    return kernel


# --------------------------------- pallas_call glue ---------------------------------

def _ew_call(kernel, slab, tile, scalars=(), extras=()):
    """Tiled elementwise pallas_call over the lane-dense slab (double-buffered)."""
    c, p = slab.shape
    vspec = pl.BlockSpec((c, tile), lambda i: (0, i))
    in_specs = [_SMEM] * len(scalars) + [vspec] * (1 + len(extras))
    return pl.pallas_call(
        kernel,
        out_shape=jax.ShapeDtypeStruct((c, p), slab.dtype),
        grid=(p // tile,),
        in_specs=in_specs,
        out_specs=vspec,
        compiler_params=pltpu.CompilerParams(dimension_semantics=("parallel",)),
    )(*scalars, slab, *extras)


def _run_ew(kernel, image, scalars=()):
    c, h, w = image.shape
    p, tile = _slab_geometry(h, w)
    slab = _to_slab(image, p)
    out = _ew_call(kernel, slab, tile, scalars=scalars)
    return _from_slab(out, image.shape)


# ------------------------------------ operators ------------------------------------

def op_identity(image, magnitude, key):
    return image                     # short-circuit: no HBM round-trip, no launch


def op_invert(image, magnitude, key):
    return _run_ew(_invert_kernel, image)


def op_brightness(image, magnitude, key):
    return _run_ew(_brightness_kernel, image, scalars=(_scalar(magnitude),))


def op_solarize(image, magnitude, key):
    return _run_ew(_solarize_kernel, image, scalars=(_scalar(magnitude),))


def op_saturation(image, magnitude, key):
    return _run_ew(_saturation_kernel, image, scalars=(_scalar(magnitude),))


def op_contrast(image, magnitude, key):
    c, h, w = image.shape
    p, tile = _slab_geometry(h, w)
    slab = _to_slab(image, p)
    if p == tile:
        # Small/medium image: whole slab fits one tile -> fused single pass.
        out = pl.pallas_call(
            _make_contrast_fused_kernel(1.0 / float(h * w)),
            out_shape=jax.ShapeDtypeStruct(slab.shape, slab.dtype),
            in_specs=[_SMEM, _VMEM],
            out_specs=_VMEM,
        )(_scalar(magnitude), slab)
    else:
        # Large image: tiled reduction followed by tiled elementwise rescale.
        gsum = pl.pallas_call(
            _gray_sum_kernel,
            out_shape=jax.ShapeDtypeStruct((1, 1), jnp.float32),
            grid=(p // tile,),
            in_specs=[pl.BlockSpec((c, tile), lambda i: (0, i))],
            out_specs=pl.BlockSpec((1, 1), lambda i: (0, 0)),
            compiler_params=pltpu.CompilerParams(dimension_semantics=("arbitrary",)),
        )(slab)
        mean = gsum[0, 0] / float(h * w)
        out = _ew_call(_contrast_kernel, slab, tile,
                       scalars=(_scalar(magnitude), _scalar(mean)))
    return _from_slab(out, image.shape)


def op_gaussian_noise(image, magnitude, key):
    c, h, w = image.shape
    p, tile = _slab_geometry(h, w)
    slab = _to_slab(image, p)
    # Noise drawn directly in the lane-dense working layout (outside the kernel).
    # TODO(synk): generate with pltpu.prng_* inside the kernel to avoid the noise
    #             slab's extra HBM read on large images.
    noise = jax.random.normal(key, slab.shape, dtype=slab.dtype)
    out = _ew_call(_add_noise_kernel, slab, tile,
                   scalars=(_scalar(magnitude),), extras=(noise,))
    return _from_slab(out, image.shape)


def op_sharpness(image, magnitude, key):
    c, h, w = image.shape
    hw = h * w
    p = pl.cdiv(hw, LANE) * LANE
    slab = _to_slab(image, p)
    # Interior mask (1 = blur applied, 0 = keep original): border + pad pixels stay.
    idx = jnp.arange(p)
    yy = idx // w
    xx = idx % w
    interior = (idx < hw) & (yy >= 1) & (yy <= h - 2) & (xx >= 1) & (xx <= w - 2)
    mask = interior.astype(slab.dtype)[None, :]               # (1, P)
    out = pl.pallas_call(
        _make_sharpness_kernel(w),
        out_shape=jax.ShapeDtypeStruct(slab.shape, slab.dtype),
        in_specs=[_SMEM, _VMEM, _VMEM],
        out_specs=_VMEM,
        compiler_params=pltpu.CompilerParams(vmem_limit_bytes=32 * 1024 * 1024),
    )(_scalar(magnitude), slab, mask)
    # TODO(synk): for very large images, tile Sharpness with halo index_maps instead
    #             of a single whole-image VMEM block.
    return _from_slab(out, image.shape)


_OP_DISPATCH = {
    'Identity': op_identity,
    'Invert': op_invert,
    'Brightness': op_brightness,
    'Solarize': op_solarize,
    'Contrast': op_contrast,
    'Saturation': op_saturation,
    'Sharpness': op_sharpness,
    'GaussianNoise': op_gaussian_noise,
}


# ----------------------------------- module wrapper -----------------------------------

class HorizonmsTrivialAugment:
    """JAX/Pallas port of horizonms HorizonmsTrivialAugment (photometric subset).

    The random op choice and the (un-binned) random magnitude are sampled on
    device and dispatched through lax.switch under one jax.jit, so there is no
    host<->device sync per image.
    """

    def __init__(self, augment_operators):
        self.augment_operators = augment_operators
        self._support_operators = set(SUPPORT_OPERATORS)
        names = [aug['name'] for aug in augment_operators]
        assert set(names).issubset(self._support_operators), \
            f'Supported operators are {self._support_operators}'
        assert set(names).issubset(set(_OP_DISPATCH)), \
            'Only photometric operators are implemented as Pallas kernels'
        self._forward = jax.jit(self._build_forward())

    def _build_forward(self):
        configs = [dict(cfg) for cfg in self.augment_operators]

        def forward(image, key):
            k_op, k_mag, k_noise = jax.random.split(key, 3)
            op_index = jax.random.randint(k_op, (), 0, len(configs))
            u = jax.random.uniform(k_mag, (), dtype=jnp.float32)  # not binned

            branches = []
            for cfg in configs:
                name = cfg['name']
                prange = cfg.get('param_range', None)

                def make_branch(name=name, prange=prange):
                    def branch(img, u, nkey):
                        if prange is None:
                            mag = jnp.float32(0.0)
                        else:
                            lo, hi = float(prange[0]), float(prange[1])
                            mag = lo + u * (hi - lo)
                        return _OP_DISPATCH[name](img, mag, nkey)
                    return branch

                branches.append(make_branch())

            return lax.switch(op_index, branches, image, u, k_noise)

        return forward

    def __call__(self, image, target=None, *, key):
        out = self._forward(image, key)
        return out, target

    def __repr__(self):
        return f'{self.__class__.__name__}(augment_operators={self.augment_operators})'


AUGMENT_OPERATORS = [
    {'name': 'Identity'},
    {'name': 'Brightness', 'param_range': [-0.3, 0.3]},
    {'name': 'Contrast', 'param_range': [-0.3, 0.3]},
    {'name': 'Saturation', 'param_range': [-0.3, 0.3]},
    {'name': 'Sharpness', 'param_range': [-0.5, 0.5]},
    {'name': 'Solarize', 'param_range': [0.5, 1.0]},
    {'name': 'Invert'},
    {'name': 'GaussianNoise', 'param_range': [0.0, 0.1]},
]


if __name__ == "__main__":
    key = jax.random.PRNGKey(0)
    k_img, k_fwd = jax.random.split(key)
    # CHW float32 image in [0, 1] (RGB), small spatial size.
    image = jax.random.uniform(k_img, (3, 16, 16), dtype=jnp.float32)

    aug = HorizonmsTrivialAugment(AUGMENT_OPERATORS)
    out, _ = aug(image, None, key=k_fwd)
    out = jax.block_until_ready(out)
    assert out.shape == image.shape and out.dtype == image.dtype
    assert bool(jnp.all(jnp.isfinite(out)))

    # Exercise every implemented operator kernel once with a deterministic magnitude.
    for cfg in AUGMENT_OPERATORS:
        name = cfg['name']
        mag = jnp.float32(cfg['param_range'][1]) if 'param_range' in cfg else jnp.float32(0.0)
        y = _OP_DISPATCH[name](image, mag, jax.random.PRNGKey(1))
        y = jax.block_until_ready(y)
        assert y.shape == image.shape
        assert bool(jnp.all(jnp.isfinite(y)))
        assert bool(jnp.all((y >= 0.0) & (y <= 1.0)))

    print("KERNEL_OK")
</pallas_src>

<mosaic_0001>
module attributes {stable_mosaic.version = 11 : i64} {
  func.func @_brightness_kernel(%arg0: i32, %arg1: memref<1xf32, #tpu.memory_space<smem>>, %arg2: memref<3x256xf32, #tpu.memory_space<vmem>>, %arg3: memref<3x256xf32, #tpu.memory_space<vmem>>) attributes {dimension_semantics = [#tpu.dimension_semantics<parallel>], iteration_bounds = array<i64: 1>, scalar_prefetch = 0 : i64, scratch_operands = 0 : i64, tpu.core_type = #tpu.core_type<tc>, window_params = [{transform_indices = @transform_0, window_bounds = array<i64: 1>}, {transform_indices = @transform_1, window_bounds = array<i64: 3, 256>}, {transform_indices = @transform_2, window_bounds = array<i64: 3, 256>}]} {
    %c0 = arith.constant 0 : index
    %c0_0 = arith.constant 0 : index
    %0 = vector.load %arg2[%c0, %c0_0] : memref<3x256xf32, #tpu.memory_space<vmem>>, vector<3x256xf32>
    %c0_1 = arith.constant 0 : index
    %1 = memref.load %arg1[%c0_1] : memref<1xf32, #tpu.memory_space<smem>>
    %cst = arith.constant 1.000000e+00 : f32
    %2 = arith.addf %cst, %1 : f32
    %3 = vector.broadcast %2 : f32 to vector<3x256xf32>
    %4 = arith.mulf %0, %3 : vector<3x256xf32>
    %cst_2 = arith.constant 0.000000e+00 : f32
    %cst_3 = arith.constant 1.000000e+00 : f32
    %5 = vector.broadcast %cst_2 : f32 to vector<3x256xf32>
    %6 = arith.maximumf %5, %4 : vector<3x256xf32>
    %7 = vector.broadcast %cst_3 : f32 to vector<3x256xf32>
    %8 = arith.minimumf %7, %6 : vector<3x256xf32>
    %c0_4 = arith.constant 0 : index
    %c0_5 = arith.constant 0 : index
    %9 = vector.load %arg3[%c0_4, %c0_5] : memref<3x256xf32, #tpu.memory_space<vmem>>, vector<3x256xf32>
    tpu.vector_store %arg3[%c0_4, %c0_5], %8 {strides = array<i32>} : memref<3x256xf32, #tpu.memory_space<vmem>>, vector<3x256xf32>,
    return
  }
  func.func @transform_0(%arg0: i32) -> i32 {
    %c0_i32 = arith.constant 0 : i32
    %c0_i32_0 = arith.constant 0 : i32
    return %c0_i32 : i32
  }
  func.func @transform_1(%arg0: i32) -> (i32, i32) {
    %c0_i32 = arith.constant 0 : i32
    %c0_i32_0 = arith.constant 0 : i32
    return %c0_i32, %arg0 : i32, i32
  }
  func.func @transform_2(%arg0: i32) -> (i32, i32) {
    %c0_i32 = arith.constant 0 : i32
    %c0_i32_0 = arith.constant 0 : i32
    return %c0_i32, %arg0 : i32, i32
  }
}

module attributes {stable_mosaic.version = 11 : i64} {
  func.func @kernel(%arg0: memref<1xf32, #tpu.memory_space<smem>>, %arg1: memref<3x256xf32, #tpu.memory_space<vmem>>, %arg2: memref<1x256xf32, #tpu.memory_space<vmem>>, %arg3: memref<3x256xf32, #tpu.memory_space<vmem>>) attributes {dimension_semantics = [], scalar_prefetch = 0 : i64, scratch_operands = 0 : i64, tpu.core_type = #tpu.core_type<tc>} {
    %c0 = arith.constant 0 : index
    %c0_0 = arith.constant 0 : index
    %0 = vector.load %arg1[%c0, %c0_0] : memref<3x256xf32, #tpu.memory_space<vmem>>, vector<3x256xf32>
    %cst = arith.constant 5.000000e+00 : f32
    %1 = vector.broadcast %cst : f32 to vector<3x256xf32>
    %2 = arith.mulf %1, %0 : vector<3x256xf32>
    %3 = vector.extract_strided_slice %0 {offsets = [0, 239], sizes = [3, 17], strides = [1, 1]} : vector<3x256xf32> to vector<3x17xf32>
    %4 = vector.extract_strided_slice %0 {offsets = [0, 0], sizes = [3, 239], strides = [1, 1]} : vector<3x256xf32> to vector<3x239xf32>
    %5 = tpu.concatenate %3, %4 in 1 : vector<3x17xf32>, vector<3x239xf32> -> vector<3x256xf32>
    %6 = arith.addf %2, %5 : vector<3x256xf32>
    %7 = vector.extract_strided_slice %0 {offsets = [0, 240], sizes = [3, 16], strides = [1, 1]} : vector<3x256xf32> to vector<3x16xf32>
    %8 = vector.extract_strided_slice %0 {offsets = [0, 0], sizes = [3, 240], strides = [1, 1]} : vector<3x256xf32> to vector<3x240xf32>
    %9 = tpu.concatenate %7, %8 in 1 : vector<3x16xf32>, vector<3x240xf32> -> vector<3x256xf32>
    %10 = arith.addf %6, %9 : vector<3x256xf32>
    %11 = vector.extract_strided_slice %0 {offsets = [0, 241], sizes = [3, 15], strides = [1, 1]} : vector<3x256xf32> to vector<3x15xf32>
    %12 = vector.extract_strided_slice %0 {offsets = [0, 0], sizes = [3, 241], strides = [1, 1]} : vector<3x256xf32> to vector<3x241xf32>
    %13 = tpu.concatenate %11, %12 in 1 : vector<3x15xf32>, vector<3x241xf32> -> vector<3x256xf32>
    %14 = arith.addf %10, %13 : vector<3x256xf32>
    %15 = vector.extract_strided_slice %0 {offsets = [0, 255], sizes = [3, 1], strides = [1, 1]} : vector<3x256xf32> to vector<3x1xf32>
    %16 = vector.extract_strided_slice %0 {offsets = [0, 0], sizes = [3, 255], strides = [1, 1]} : vector<3x256xf32> to vector<3x255xf32>
    %17 = tpu.concatenate %15, %16 in 1 : vector<3x1xf32>, vector<3x255xf32> -> vector<3x256xf32>
    %18 = arith.addf %14, %17 : vector<3x256xf32>
    %19 = vector.extract_strided_slice %0 {offsets = [0, 1], sizes = [3, 255], strides = [1, 1]} : vector<3x256xf32> to vector<3x255xf32>
    %20 = vector.extract_strided_slice %0 {offsets = [0, 0], sizes = [3, 1], strides = [1, 1]} : vector<3x256xf32> to vector<3x1xf32>
    %21 = tpu.concatenate %19, %20 in 1 : vector<3x255xf32>, vector<3x1xf32> -> vector<3x256xf32>
    %22 = arith.addf %18, %21 : vector<3x256xf32>
    %23 = vector.extract_strided_slice %0 {offsets = [0, 15], sizes = [3, 241], strides = [1, 1]} : vector<3x256xf32> to vector<3x241xf32>
    %24 = vector.extract_strided_slice %0 {offsets = [0, 0], sizes = [3, 15], strides = [1, 1]} : vector<3x256xf32> to vector<3x15xf32>
    %25 = tpu.concatenate %23, %24 in 1 : vector<3x241xf32>, vector<3x15xf32> -> vector<3x256xf32>
    %26 = arith.addf %22, %25 : vector<3x256xf32>
    %27 = vector.extract_strided_slice %0 {offsets = [0, 16], sizes = [3, 240], strides = [1, 1]} : vector<3x256xf32> to vector<3x240xf32>
    %28 = vector.extract_strided_slice %0 {offsets = [0, 0], sizes = [3, 16], strides = [1, 1]} : vector<3x256xf32> to vector<3x16xf32>
    %29 = tpu.concatenate %27, %28 in 1 : vector<3x240xf32>, vector<3x16xf32> -> vector<3x256xf32>
    %30 = arith.addf %26, %29 : vector<3x256xf32>
    %31 = vector.extract_strided_slice %0 {offsets = [0, 17], sizes = [3, 239], strides = [1, 1]} : vector<3x256xf32> to vector<3x239xf32>
    %32 = vector.extract_strided_slice %0 {offsets = [0, 0], sizes = [3, 17], strides = [1, 1]} : vector<3x256xf32> to vector<3x17xf32>
    %33 = tpu.concatenate %31, %32 in 1 : vector<3x239xf32>, vector<3x17xf32> -> vector<3x256xf32>
    %34 = arith.addf %30, %33 : vector<3x256xf32>
    %cst_1 = arith.constant 0.0769230798 : f32
    %35 = vector.broadcast %cst_1 : f32 to vector<3x256xf32>
    %36 = arith.mulf %34, %35 : vector<3x256xf32>
    %cst_2 = arith.constant 0.000000e+00 : f32
    %cst_3 = arith.constant 1.000000e+00 : f32
    %37 = vector.broadcast %cst_2 : f32 to vector<3x256xf32>
    %38 = arith.maximumf %37, %36 : vector<3x256xf32>
    %39 = vector.broadcast %cst_3 : f32 to vector<3x256xf32>
    %40 = arith.minimumf %39, %38 : vector<3x256xf32>
    %c0_4 = arith.constant 0 : index
    %41 = memref.load %arg0[%c0_4] : memref<1xf32, #tpu.memory_space<smem>>
    %cst_5 = arith.constant 1.000000e+00 : f32
    %42 = arith.addf %cst_5, %41 : f32
    %43 = arith.subf %0, %40 : vector<3x256xf32>
    %44 = vector.broadcast %42 : f32 to vector<3x256xf32>
    %45 = arith.mulf %44, %43 : vector<3x256xf32>
    %46 = arith.addf %40, %45 : vector<3x256xf32>
    %cst_6 = arith.constant 0.000000e+00 : f32
    %cst_7 = arith.constant 1.000000e+00 : f32
    %47 = vector.broadcast %cst_6 : f32 to vector<3x256xf32>
    %48 = arith.maximumf %47, %46 : vector<3x256xf32>
    %49 = vector.broadcast %cst_7 : f32 to vector<3x256xf32>
    %50 = arith.minimumf %49, %48 : vector<3x256xf32>
    %c0_8 = arith.constant 0 : index
    %c0_9 = arith.constant 0 : index
    %51 = vector.load %arg2[%c0_8, %c0_9] : memref<1x256xf32, #tpu.memory_space<vmem>>, vector<1x256xf32>
    %cst_10 = arith.constant 5.000000e-01 : f32
    %52 = vector.broadcast %cst_10 : f32 to vector<1x256xf32>
    %53 = arith.cmpf ogt, %51, %52 : vector<1x256xf32>
    %54 = vector.shape_cast %53 : vector<1x256xi1> to vector<1x256xi1>
    %55 = vector.broadcast %54 : vector<1x256xi1> to vector<3x256xi1>
    %56 = arith.select %55, %50, %0 : vector<3x256xi1>, vector<3x256xf32>
    %c0_11 = arith.constant 0 : index
    %c0_12 = arith.constant 0 : index
    %57 = vector.load %arg3[%c0_11, %c0_12] : memref<3x256xf32, #tpu.memory_space<vmem>>, vector<3x256xf32>
    tpu.vector_store %arg3[%c0_11, %c0_12], %56 {strides = array<i32>} : memref<3x256xf32, #tpu.memory_space<vmem>>, vector<3x256xf32>,
    return
  }
}

module attributes {stable_mosaic.version = 11 : i64} {
  func.func @kernel(%arg0: memref<1xf32, #tpu.memory_space<smem>>, %arg1: memref<3x256xf32, #tpu.memory_space<vmem>>, %arg2: memref<3x256xf32, #tpu.memory_space<vmem>>) attributes {dimension_semantics = [], scalar_prefetch = 0 : i64, scratch_operands = 0 : i64, tpu.core_type = #tpu.core_type<tc>} {
    %c0 = arith.constant 0 : index
    %c0_0 = arith.constant 0 : index
    %0 = vector.load %arg1[%c0, %c0_0] : memref<3x256xf32, #tpu.memory_space<vmem>>, vector<3x256xf32>
    %1 = vector.extract_strided_slice %0 {offsets = [0, 0], sizes = [1, 256], strides = [1, 1]} : vector<3x256xf32> to vector<1x256xf32>
    %2 = vector.shape_cast %1 : vector<1x256xf32> to vector<256xf32>
    %cst = arith.constant 2.990000e-01 : f32
    %3 = vector.broadcast %cst : f32 to vector<256xf32>
    %4 = arith.mulf %3, %2 : vector<256xf32>
    %5 = vector.extract_strided_slice %0 {offsets = [1, 0], sizes = [1, 256], strides = [1, 1]} : vector<3x256xf32> to vector<1x256xf32>
    %6 = vector.shape_cast %5 : vector<1x256xf32> to vector<256xf32>
    %cst_1 = arith.constant 5.870000e-01 : f32
    %7 = vector.broadcast %cst_1 : f32 to vector<256xf32>
    %8 = arith.mulf %7, %6 : vector<256xf32>
    %9 = arith.addf %4, %8 : vector<256xf32>
    %10 = vector.extract_strided_slice %0 {offsets = [2, 0], sizes = [1, 256], strides = [1, 1]} : vector<3x256xf32> to vector<1x256xf32>
    %11 = vector.shape_cast %10 : vector<1x256xf32> to vector<256xf32>
    %cst_2 = arith.constant 1.140000e-01 : f32
    %12 = vector.broadcast %cst_2 : f32 to vector<256xf32>
    %13 = arith.mulf %12, %11 : vector<256xf32>
    %14 = arith.addf %9, %13 : vector<256xf32>
    %15 = vector.shape_cast %14 : vector<256xf32> to vector<1x256xf32>
    %cst_3 = arith.constant dense<0.000000e+00> : vector<1xf32>
    %16 = vector.multi_reduction <add>, %15, %cst_3 [1] : vector<1x256xf32> to vector<1xf32>
    %17 = vector.shape_cast %16 : vector<1xf32> to vector<1x1xf32>
    %18 = vector.extract %17[0, 0] : f32 from vector<1x1xf32>
    %cst_4 = arith.constant 3.906250e-03 : f32
    %19 = arith.mulf %18, %cst_4 : f32
    %20 = vector.broadcast %19 : f32 to vector<3x256xf32>
    %21 = arith.subf %0, %20 : vector<3x256xf32>
    %c0_5 = arith.constant 0 : index
    %22 = memref.load %arg0[%c0_5] : memref<1xf32, #tpu.memory_space<smem>>
    %cst_6 = arith.constant 1.000000e+00 : f32
    %23 = arith.addf %cst_6, %22 : f32
    %24 = vector.broadcast %23 : f32 to vector<3x256xf32>
    %25 = arith.mulf %21, %24 : vector<3x256xf32>
    %26 = vector.broadcast %19 : f32 to vector<3x256xf32>
    %27 = arith.addf %26, %25 : vector<3x256xf32>
    %cst_7 = arith.constant 0.000000e+00 : f32
    %cst_8 = arith.constant 1.000000e+00 : f32
    %28 = vector.broadcast %cst_7 : f32 to vector<3x256xf32>
    %29 = arith.maximumf %28, %27 : vector<3x256xf32>
    %30 = vector.broadcast %cst_8 : f32 to vector<3x256xf32>
    %31 = arith.minimumf %30, %29 : vector<3x256xf32>
    %c0_9 = arith.constant 0 : index
    %c0_10 = arith.constant 0 : index
    %32 = vector.load %arg2[%c0_9, %c0_10] : memref<3x256xf32, #tpu.memory_space<vmem>>, vector<3x256xf32>
    tpu.vector_store %arg2[%c0_9, %c0_10], %31 {strides = array<i32>} : memref<3x256xf32, #tpu.memory_space<vmem>>, vector<3x256xf32>,
    return
  }
}

module attributes {stable_mosaic.version = 11 : i64} {
  func.func @_saturation_kernel(%arg0: i32, %arg1: memref<1xf32, #tpu.memory_space<smem>>, %arg2: memref<3x256xf32, #tpu.memory_space<vmem>>, %arg3: memref<3x256xf32, #tpu.memory_space<vmem>>) attributes {dimension_semantics = [#tpu.dimension_semantics<parallel>], iteration_bounds = array<i64: 1>, scalar_prefetch = 0 : i64, scratch_operands = 0 : i64, tpu.core_type = #tpu.core_type<tc>, window_params = [{transform_indices = @transform_0, window_bounds = array<i64: 1>}, {transform_indices = @transform_1, window_bounds = array<i64: 3, 256>}, {transform_indices = @transform_2, window_bounds = array<i64: 3, 256>}]} {
    %c0 = arith.constant 0 : index
    %c0_0 = arith.constant 0 : index
    %0 = vector.load %arg2[%c0, %c0_0] : memref<3x256xf32, #tpu.memory_space<vmem>>, vector<3x256xf32>
    %1 = vector.extract_strided_slice %0 {offsets = [0, 0], sizes = [1, 256], strides = [1, 1]} : vector<3x256xf32> to vector<1x256xf32>
    %2 = vector.shape_cast %1 : vector<1x256xf32> to vector<256xf32>
    %cst = arith.constant 2.990000e-01 : f32
    %3 = vector.broadcast %cst : f32 to vector<256xf32>
    %4 = arith.mulf %3, %2 : vector<256xf32>
    %5 = vector.extract_strided_slice %0 {offsets = [1, 0], sizes = [1, 256], strides = [1, 1]} : vector<3x256xf32> to vector<1x256xf32>
    %6 = vector.shape_cast %5 : vector<1x256xf32> to vector<256xf32>
    %cst_1 = arith.constant 5.870000e-01 : f32
    %7 = vector.broadcast %cst_1 : f32 to vector<256xf32>
    %8 = arith.mulf %7, %6 : vector<256xf32>
    %9 = arith.addf %4, %8 : vector<256xf32>
    %10 = vector.extract_strided_slice %0 {offsets = [2, 0], sizes = [1, 256], strides = [1, 1]} : vector<3x256xf32> to vector<1x256xf32>
    %11 = vector.shape_cast %10 : vector<1x256xf32> to vector<256xf32>
    %cst_2 = arith.constant 1.140000e-01 : f32
    %12 = vector.broadcast %cst_2 : f32 to vector<256xf32>
    %13 = arith.mulf %12, %11 : vector<256xf32>
    %14 = arith.addf %9, %13 : vector<256xf32>
    %15 = vector.shape_cast %14 : vector<256xf32> to vector<1x256xf32>
    %16 = vector.broadcast %15 : vector<1x256xf32> to vector<3x256xf32>
    %17 = arith.subf %0, %16 : vector<3x256xf32>
    %c0_3 = arith.constant 0 : index
    %18 = memref.load %arg1[%c0_3] : memref<1xf32, #tpu.memory_space<smem>>
    %cst_4 = arith.constant 1.000000e+00 : f32
    %19 = arith.addf %cst_4, %18 : f32
    %20 = vector.broadcast %19 : f32 to vector<3x256xf32>
    %21 = arith.mulf %17, %20 : vector<3x256xf32>
    %22 = vector.broadcast %15 : vector<1x256xf32> to vector<3x256xf32>
    %23 = arith.addf %22, %21 : vector<3x256xf32>
    %cst_5 = arith.constant 0.000000e+00 : f32
    %cst_6 = arith.constant 1.000000e+00 : f32
    %24 = vector.broadcast %cst_5 : f32 to vector<3x256xf32>
    %25 = arith.maximumf %24, %23 : vector<3x256xf32>
    %26 = vector.broadcast %cst_6 : f32 to vector<3x256xf32>
    %27 = arith.minimumf %26, %25 : vector<3x256xf32>
    %c0_7 = arith.constant 0 : index
    %c0_8 = arith.constant 0 : index
    %28 = vector.load %arg3[%c0_7, %c0_8] : memref<3x256xf32, #tpu.memory_space<vmem>>, vector<3x256xf32>
    tpu.vector_store %arg3[%c0_7, %c0_8], %27 {strides = array<i32>} : memref<3x256xf32, #tpu.memory_space<vmem>>, vector<3x256xf32>,
    return
  }
  func.func @transform_0(%arg0: i32) -> i32 {
    %c0_i32 = arith.constant 0 : i32
    %c0_i32_0 = arith.constant 0 : i32
    return %c0_i32 : i32
  }
  func.func @transform_1(%arg0: i32) -> (i32, i32) {
    %c0_i32 = arith.constant 0 : i32
    %c0_i32_0 = arith.constant 0 : i32
    return %c0_i32, %arg0 : i32, i32
  }
  func.func @transform_2(%arg0: i32) -> (i32, i32) {
    %c0_i32 = arith.constant 0 : i32
    %c0_i32_0 = arith.constant 0 : i32
    return %c0_i32, %arg0 : i32, i32
  }
}

module attributes {stable_mosaic.version = 11 : i64} {
  func.func @_solarize_kernel(%arg0: i32, %arg1: memref<1xf32, #tpu.memory_space<smem>>, %arg2: memref<3x256xf32, #tpu.memory_space<vmem>>, %arg3: memref<3x256xf32, #tpu.memory_space<vmem>>) attributes {dimension_semantics = [#tpu.dimension_semantics<parallel>], iteration_bounds = array<i64: 1>, scalar_prefetch = 0 : i64, scratch_operands = 0 : i64, tpu.core_type = #tpu.core_type<tc>, window_params = [{transform_indices = @transform_0, window_bounds = array<i64: 1>}, {transform_indices = @transform_1, window_bounds = array<i64: 3, 256>}, {transform_indices = @transform_2, window_bounds = array<i64: 3, 256>}]} {
    %c0 = arith.constant 0 : index
    %c0_0 = arith.constant 0 : index
    %0 = vector.load %arg2[%c0, %c0_0] : memref<3x256xf32, #tpu.memory_space<vmem>>, vector<3x256xf32>
    %c0_1 = arith.constant 0 : index
    %1 = memref.load %arg1[%c0_1] : memref<1xf32, #tpu.memory_space<smem>>
    %2 = vector.broadcast %1 : f32 to vector<3x256xf32>
    %3 = arith.cmpf oge, %0, %2 : vector<3x256xf32>
    %cst = arith.constant 1.000000e+00 : f32
    %4 = vector.broadcast %cst : f32 to vector<3x256xf32>
    %5 = arith.subf %4, %0 : vector<3x256xf32>
    %6 = arith.select %3, %5, %0 : vector<3x256xi1>, vector<3x256xf32>
    %c0_2 = arith.constant 0 : index
    %c0_3 = arith.constant 0 : index
    %7 = vector.load %arg3[%c0_2, %c0_3] : memref<3x256xf32, #tpu.memory_space<vmem>>, vector<3x256xf32>
    tpu.vector_store %arg3[%c0_2, %c0_3], %6 {strides = array<i32>} : memref<3x256xf32, #tpu.memory_space<vmem>>, vector<3x256xf32>,
    return
  }
  func.func @transform_0(%arg0: i32) -> i32 {
    %c0_i32 = arith.constant 0 : i32
    %c0_i32_0 = arith.constant 0 : i32
    return %c0_i32 : i32
  }
  func.func @transform_1(%arg0: i32) -> (i32, i32) {
    %c0_i32 = arith.constant 0 : i32
    %c0_i32_0 = arith.constant 0 : i32
    return %c0_i32, %arg0 : i32, i32
  }
  func.func @transform_2(%arg0: i32) -> (i32, i32) {
    %c0_i32 = arith.constant 0 : i32
    %c0_i32_0 = arith.constant 0 : i32
    return %c0_i32, %arg0 : i32, i32
  }
}

module attributes {stable_mosaic.version = 11 : i64} {
  func.func @_invert_kernel(%arg0: i32, %arg1: memref<3x256xf32, #tpu.memory_space<vmem>>, %arg2: memref<3x256xf32, #tpu.memory_space<vmem>>) attributes {dimension_semantics = [#tpu.dimension_semantics<parallel>], iteration_bounds = array<i64: 1>, scalar_prefetch = 0 : i64, scratch_operands = 0 : i64, tpu.core_type = #tpu.core_type<tc>, window_params = [{transform_indices = @transform_0, window_bounds = array<i64: 3, 256>}, {transform_indices = @transform_1, window_bounds = array<i64: 3, 256>}]} {
    %c0 = arith.constant 0 : index
    %c0_0 = arith.constant 0 : index
    %0 = vector.load %arg1[%c0, %c0_0] : memref<3x256xf32, #tpu.memory_space<vmem>>, vector<3x256xf32>
    %cst = arith.constant 1.000000e+00 : f32
    %1 = vector.broadcast %cst : f32 to vector<3x256xf32>
    %2 = arith.subf %1, %0 : vector<3x256xf32>
    %c0_1 = arith.constant 0 : index
    %c0_2 = arith.constant 0 : index
    %3 = vector.load %arg2[%c0_1, %c0_2] : memref<3x256xf32, #tpu.memory_space<vmem>>, vector<3x256xf32>
    tpu.vector_store %arg2[%c0_1, %c0_2], %2 {strides = array<i32>} : memref<3x256xf32, #tpu.memory_space<vmem>>, vector<3x256xf32>,
    return
  }
  func.func @transform_0(%arg0: i32) -> (i32, i32) {
    %c0_i32 = arith.constant 0 : i32
    %c0_i32_0 = arith.constant 0 : i32
    return %c0_i32, %arg0 : i32, i32
  }
  func.func @transform_1(%arg0: i32) -> (i32, i32) {
    %c0_i32 = arith.constant 0 : i32
    %c0_i32_0 = arith.constant 0 : i32
    return %c0_i32, %arg0 : i32, i32
  }
}

module attributes {stable_mosaic.version = 11 : i64} {
  func.func @_add_noise_kernel(%arg0: i32, %arg1: memref<1xf32, #tpu.memory_space<smem>>, %arg2: memref<3x256xf32, #tpu.memory_space<vmem>>, %arg3: memref<3x256xf32, #tpu.memory_space<vmem>>, %arg4: memref<3x256xf32, #tpu.memory_space<vmem>>) attributes {dimension_semantics = [#tpu.dimension_semantics<parallel>], iteration_bounds = array<i64: 1>, scalar_prefetch = 0 : i64, scratch_operands = 0 : i64, tpu.core_type = #tpu.core_type<tc>, window_params = [{transform_indices = @transform_0, window_bounds = array<i64: 1>}, {transform_indices = @transform_1, window_bounds = array<i64: 3, 256>}, {transform_indices = @transform_2, window_bounds = array<i64: 3, 256>}, {transform_indices = @transform_3, window_bounds = array<i64: 3, 256>}]} {
    %c0 = arith.constant 0 : index
    %c0_0 = arith.constant 0 : index
    %0 = vector.load %arg2[%c0, %c0_0] : memref<3x256xf32, #tpu.memory_space<vmem>>, vector<3x256xf32>
    %c0_1 = arith.constant 0 : index
    %1 = memref.load %arg1[%c0_1] : memref<1xf32, #tpu.memory_space<smem>>
    %c0_2 = arith.constant 0 : index
    %c0_3 = arith.constant 0 : index
    %2 = vector.load %arg3[%c0_2, %c0_3] : memref<3x256xf32, #tpu.memory_space<vmem>>, vector<3x256xf32>
    %3 = vector.broadcast %1 : f32 to vector<3x256xf32>
    %4 = arith.mulf %3, %2 : vector<3x256xf32>
    %5 = arith.addf %0, %4 : vector<3x256xf32>
    %cst = arith.constant 0.000000e+00 : f32
    %cst_4 = arith.constant 1.000000e+00 : f32
    %6 = vector.broadcast %cst : f32 to vector<3x256xf32>
    %7 = arith.maximumf %6, %5 : vector<3x256xf32>
    %8 = vector.broadcast %cst_4 : f32 to vector<3x256xf32>
    %9 = arith.minimumf %8, %7 : vector<3x256xf32>
    %c0_5 = arith.constant 0 : index
    %c0_6 = arith.constant 0 : index
    %10 = vector.load %arg4[%c0_5, %c0_6] : memref<3x256xf32, #tpu.memory_space<vmem>>, vector<3x256xf32>
    tpu.vector_store %arg4[%c0_5, %c0_6], %9 {strides = array<i32>} : memref<3x256xf32, #tpu.memory_space<vmem>>, vector<3x256xf32>,
    return
  }
  func.func @transform_0(%arg0: i32) -> i32 {
    %c0_i32 = arith.constant 0 : i32
    %c0_i32_0 = arith.constant 0 : i32
    return %c0_i32 : i32
  }
  func.func @transform_1(%arg0: i32) -> (i32, i32) {
    %c0_i32 = arith.constant 0 : i32
    %c0_i32_0 = arith.constant 0 : i32
    return %c0_i32, %arg0 : i32, i32
  }
  func.func @transform_2(%arg0: i32) -> (i32, i32) {
    %c0_i32 = arith.constant 0 : i32
    %c0_i32_0 = arith.constant 0 : i32
    return %c0_i32, %arg0 : i32, i32
  }
  func.func @transform_3(%arg0: i32) -> (i32, i32) {
    %c0_i32 = arith.constant 0 : i32
    %c0_i32_0 = arith.constant 0 : i32
    return %c0_i32, %arg0 : i32, i32
  }
}

</mosaic_0001>

<bundles_post_ra>
// kernel: branch_1_fun.1
= control target key start
LH: loop header
LB: loop body
LE: loop exit
PB: predicated region body
PF: predicated region fallthrough
CT: control target
= control target key end

     0   :  { %s48_s0 = inlined_call_operand.<no memory space> [shape: f32[1], index: 0, kind: input, shape index: {}]   ;;  %s49_s1 = inlined_call_operand.vmem [shape: f32[3,256], index: 1, kind: input, shape index: {}]   ;;  %s50_s2 = inlined_call_operand.vmem [shape: f32[3,256], index: 2, kind: output, shape index: {}]  }
   0x1   :  { %v12_v0 = vld [vmem:[%s49_s1] sm:$0x77]  ;;  %s14_s13 = sadd.f32 1.0, %s48_s0 }
   0x3   :  { %v15_v1 = vstv %s14_s13 }
   0x4   :  { %v16_v2 = vmul.f32 %v15_v1, %v12_v0 }
   0x6   :  { %v17_v3 = vmax.f32 %v16_v2, 0.0 }
   0x8   :  { %v18_v4 = vmin.f32 %v17_v3, 1.0 }
   0xa   :  { %19 = vst [vmem:[%s50_s2] sm:$0x77] %v18_v4 }

// kernel: branch_2_fun.1
= control target key start
LH: loop header
LB: loop body
LE: loop exit
PB: predicated region body
PF: predicated region fallthrough
CT: control target
= control target key end

     0   :  { %vm31_vm0 = vcmask 1040384   ;;  %s81_s1 = inlined_call_operand.vmem [shape: f32[3,256], index: 1, kind: input, shape index: {}]   ;;  %s82_s0 = inlined_call_operand.<no memory space> [shape: f32[1], index: 0, kind: input, shape index: {}]   ;;  %s83_s2 = inlined_call_operand.vmem [shape: f32[3,256], index: 2, kind: output, shape index: {}]  }
   0x1   :  { %v12_v0 = vld [vmem:[%s81_s1] sm:$0x77]  ;;  %s42_s1 = sadd.f32 1.0, %s82_s0 }
   0x2   :  { %v13_v1 = vmul.f32 0.299, %v12_v0  ;;  %v14_v2 = vmul.f32 0.587, %v12_v0  ;;  %v20_v3 = vmul.f32 0.114, %v12_v0 }
   0x3   :  { %v43_v15 = vstv %s42_s1 }
   0x4   :  { %v53_v4 = vrot.slane %v14_v2, 9  ;;  %v54_v5 = vrot.slane %v20_v3, 10 }
   0x6   :  { %v19_v6 = vadd.f32 %v53_v4, %v13_v1 }
   0x8   :  { %v25_v7 = vadd.f32 %v54_v5, %v19_v6 }
   0xa   :  { %v27_v8 = vperm.slane %v25_v7, 0  ;;  %v28_v9 = vperm.slane %v25_v7, 4 }
   0xc   :  { %v32_v10 = vsel %vm31_vm0, %v27_v8, 0.0  ;;  %v33_v11 = vsel %vm31_vm0, %v28_v9, 0.0 }
   0xd   :  { %v34_v12 = vadd.f32 %v33_v11, %v32_v10 }
   0xf   :  { %35 = vadd.xlane.f32.xlu0 %v34_v12 }
  0x82   :  { %v36_v13 = vpop.xlane.xlu0 %35 }
  0x83   :  { %55 = vpush %v36_v13 }
  0xb4   :  { %s56_s13 = spop %55 }
  0xb5   :  { %s38_s14 = smul.f32 0.00390625, %s56_s13 }
  0xb7   :  { %v39_v14 = vstv %s38_s14 }
  0xb8   :  { %v40_v16 = vsub.f32 %v12_v0, %v39_v14 }
  0xba   :  { %v44_v17 = vmul.f32 %v43_v15, %v40_v16 }
  0xbc   :  { %v45_v18 = vadd.f32 %v44_v17, %v39_v14 }
  0xbe   :  { %v46_v19 = vmax.f32 %v45_v18, 0.0 }
  0xc0   :  { %v47_v20 = vmin.f32 %v46_v19, 1.0 }
  0xc2   :  { %48 = vst [vmem:[%s83_s2] sm:$0x77] %v47_v20 }

// kernel: branch_3_fun.1
= control target key start
LH: loop header
LB: loop body
LE: loop exit
PB: predicated region body
PF: predicated region fallthrough
CT: control target
= control target key end

     0   :  { %vm36_vm0 = vcmask 1043456   ;;  %s94_s1 = inlined_call_operand.vmem [shape: f32[3,256], index: 1, kind: input, shape index: {}]   ;;  %s95_s0 = inlined_call_operand.<no memory space> [shape: f32[1], index: 0, kind: input, shape index: {}]   ;;  %s96_s2 = inlined_call_operand.vmem [shape: f32[3,256], index: 2, kind: output, shape index: {}]  }
   0x1   :  { %v12_v0 = vld [vmem:[%s94_s1] sm:$0x77]  ;;  %s41_s13 = sadd.f32 1.0, %s95_s0 }
   0x2   :  { %v13_v1 = vmul.f32 0.299, %v12_v0  ;;  %v14_v2 = vmul.f32 0.587, %v12_v0  ;;  %v20_v3 = vmul.f32 0.114, %v12_v0 }
   0x3   :  { %v42_v14 = vstv %s41_s13 }
   0x4   :  { %v66_v4 = vrot.slane %v14_v2, 9  ;;  %v67_v5 = vrot.slane %v20_v3, 10 }
   0x6   :  { %v19_v6 = vadd.f32 %v66_v4, %v13_v1 }
   0x8   :  { %v25_v7 = vadd.f32 %v67_v5, %v19_v6 }
   0xa   :  { %v27_v8 = vperm.slane %v25_v7, 0  ;;  %v28_v9 = vperm.slane %v25_v7, 4 }
   0xc   :  { %v31_v10 = vperm.slane %v27_v8, 0  ;;  %v32_v11 = vperm.slane %v28_v9, 0 }
   0xe   :  { %v35_v12 = vrot.slane %v32_v11, 4 }
  0x10   :  { %v37_v13 = vsel %vm36_vm0, %v31_v10, %v35_v12 }
  0x11   :  { %v39_v15 = vsub.f32 %v12_v0, %v37_v13 }
  0x13   :  { %v43_v16 = vmul.f32 %v42_v14, %v39_v15 }
  0x15   :  { %45 = vst [vmem:[#allocation1] ss:$2 sm:$0xff] %v43_v16 }
  0x1c   :  { %v46_v17 = vld.sshfl [vmem:[#allocation1] sm:$0xff pattern:$0x75316420]  ;;  %v47_v18 = vld.sshfl [vmem:[#allocation1 + $0x8] sm:$0xff pattern:$0x75316420] }
  0x1d   :  { %v50_v19 = vadd.f32 %v46_v17, %v31_v10  ;;  %v51_v20 = vadd.f32 %v47_v18, %v32_v11 }
  0x1f   :  { %v52_v21 = vmax.f32 %v50_v19, 0.0  ;;  %v53_v22 = vmax.f32 %v51_v20, 0.0 }
  0x21   :  { %v55_v23 = vmin.f32 %v53_v22, 1.0  ;;  %v54_v24 = vmin.f32 %v52_v21, 1.0 }
  0x23   :  { %v58_v25 = vrot.slane %v55_v23, 4 }
  0x25   :  { %v59_v26 = vsel %vm36_vm0, %v54_v24, %v58_v25 }
  0x26   :  { %61 = vst [vmem:[%s96_s2] sm:$0x77] %v59_v26 }

// kernel: branch_4_fun.1
= control target key start
LH: loop header
LB: loop body
LE: loop exit
PB: predicated region body
PF: predicated region fallthrough
CT: control target
= control target key end

     0   :  { %s237_s14 = smov 17   ;;  %s238_s15 = smov 16   ;;  %vm30_vm0 = vcmask 138240   ;;  %vm52_vm1 = vcmask 130048   ;;  %vm36_vm2 = vcmask 1043456   ;;  %vm73_vm3 = vcmask 121856   ;;  %s314_s1 = inlined_call_operand.vmem [shape: f32[3,256], index: 1, kind: input, shape index: {}]   ;;  %s315_s0 = inlined_call_operand.<no memory space> [shape: f32[1], index: 0, kind: input, shape index: {}]   ;;  %s316_s2 = inlined_call_operand.vmem [shape: f32[1,256], index: 2, kind: input, shape index: {}]   ;;  %s317_s3 = inlined_call_operand.vmem [shape: f32[3,256], index: 3, kind: output, shape index: {}]  }
   0x1   :  { %v269_v0 = vld [vmem:[%s314_s1] sm:$0x77]  ;;  %s239_s1 = smov 15   ;;  %s240_s16 = smov 1   ;;  %vm94_vm4 = vcmask 7168   ;;  %vm110_vm5 = vcmask 1039360  }
   0x2   :  { %18 = vst [vmem:[#allocation1] ss:$2 sm:$0xff] %v269_v0  ;;  %s241_s17 = smov 127   ;;  %s242_s18 = smov 113   ;;  %v16_v44 = vmul.f32 5.0, %v269_v0  ;;  %vm131_vm6 = vcmask 924672  }
   0x3   :  { %s243_s19 = smov 112   ;;  %s244_s20 = smov 111   ;;  %vm152_vm7 = vcmask 916480   ;;  %vm173_vm8 = vcmask 908288  }
   0x4   :  { %s191_s23 = sadd.f32 1.0, %s315_s0 }
   0x9   :  { %v19_v1 = vld.sshfl [vmem:[#allocation1 + $0x8] sm:$0xff pattern:$0x75316420] }
   0xa   :  { %20 = vrot.lane.b32.xlu1 %v19_v1, %s237_s14  ;;  %23 = vst [vmem:[#allocation1] ss:$2 sm:$0xff] %v269_v0 }
  0x11   :  { %v24_v2 = vld.sshfl [vmem:[#allocation1] sm:$0xff pattern:$0x75316420]  ;;  %v25_v3 = vld.sshfl [vmem:[#allocation1 + $0x8] sm:$0xff pattern:$0x75316420] }
  0x12   :  { %26 = vrot.lane.b32.xlu0 %v24_v2, %s237_s14  ;;  %40 = vst [vmem:[#allocation1] ss:$2 sm:$0xff] %v269_v0 }
  0x19   :  { %v41_v4 = vld.sshfl [vmem:[#allocation1 + $0x8] sm:$0xff pattern:$0x75316420] }
  0x1a   :  { %28 = vrot.lane.b32.xlu0 %v25_v3, %s237_s14  ;;  %45 = vst [vmem:[#allocation1] ss:$2 sm:$0xff] %v269_v0  ;;  %42 = vrot.lane.b32.xlu2 %v41_v4, %s238_s15 }
  0x21   :  { %v46_v5 = vld.sshfl [vmem:[#allocation1] sm:$0xff pattern:$0x75316420]  ;;  %v47_v6 = vld.sshfl [vmem:[#allocation1 + $0x8] sm:$0xff pattern:$0x75316420] }
  0x22   :  { %48 = vrot.lane.b32.xlu1 %v46_v5, %s238_s15  ;;  %61 = vst [vmem:[#allocation1] ss:$2 sm:$0xff] %v269_v0  ;;  %50 = vrot.lane.b32.xlu2 %v47_v6, %s238_s15 }
  0x29   :  { %v62_v7 = vld.sshfl [vmem:[#allocation1 + $0x8] sm:$0xff pattern:$0x75316420] }
  0x2a   :  { %66 = vst [vmem:[#allocation1] ss:$2 sm:$0xff] %v269_v0  ;;  %63 = vrot.lane.b32.xlu2 %v62_v7, %s239_s1 }
  0x31   :  { %v68_v8 = vld.sshfl [vmem:[#allocation1 + $0x8] sm:$0xff pattern:$0x75316420]  ;;  %v67_v9 = vld.sshfl [vmem:[#allocation1] sm:$0xff pattern:$0x75316420] }
  0x32   :  { %71 = vrot.lane.b32.xlu1 %v68_v8, %s239_s1  ;;  %69 = vrot.lane.b32.xlu0 %v67_v9, %s239_s1  ;;  %82 = vst [vmem:[#allocation1] ss:$2 sm:$0xff] %v269_v0 }
  0x39   :  { %v83_v10 = vld.sshfl [vmem:[#allocation1 + $0x8] sm:$0xff pattern:$0x75316420] }
  0x3a   :  { %87 = vst [vmem:[#allocation1] ss:$2 sm:$0xff] %v269_v0  ;;  %84 = vrot.lane.b32.xlu2 %v83_v10, %s240_s16 }
  0x41   :  { %v89_v11 = vld.sshfl [vmem:[#allocation1 + $0x8] sm:$0xff pattern:$0x75316420]  ;;  %v88_v12 = vld.sshfl [vmem:[#allocation1] sm:$0xff pattern:$0x75316420] }
  0x42   :  { %92 = vrot.lane.b32.xlu1 %v89_v11, %s240_s16  ;;  %90 = vrot.lane.b32.xlu0 %v88_v12, %s240_s16  ;;  %103 = vst [vmem:[#allocation1] ss:$2 sm:$0xff] %v269_v0 }
  0x49   :  { %v105_v13 = vld.sshfl [vmem:[#allocation1 + $0x8] sm:$0xff pattern:$0x75316420]  ;;  %v104_v14 = vld.sshfl [vmem:[#allocation1] sm:$0xff pattern:$0x75316420] }
  0x4a   :  { %108 = vrot.lane.b32.xlu0 %v105_v13, %s241_s17  ;;  %113 = vst [vmem:[#allocation1] ss:$2 sm:$0xff] %v269_v0  ;;  %106 = vrot.lane.b32.xlu2 %v104_v14, %s241_s17 }
  0x51   :  { %v114_v15 = vld.sshfl [vmem:[#allocation1] sm:$0xff pattern:$0x75316420] }
  0x52   :  { %115 = vrot.lane.b32.xlu1 %v114_v15, %s241_s17  ;;  %124 = vst [vmem:[#allocation1] ss:$2 sm:$0xff] %v269_v0 }
  0x59   :  { %v126_v16 = vld.sshfl [vmem:[#allocation1 + $0x8] sm:$0xff pattern:$0x75316420]  ;;  %v125_v17 = vld.sshfl [vmem:[#allocation1] sm:$0xff pattern:$0x75316420] }
  0x5a   :  { %129 = vrot.lane.b32.xlu0 %v126_v16, %s242_s18  ;;  %134 = vst [vmem:[#allocation1] ss:$2 sm:$0xff] %v269_v0  ;;  %127 = vrot.lane.b32.xlu2 %v125_v17, %s242_s18 }
  0x61   :  { %v135_v18 = vld.sshfl [vmem:[#allocation1] sm:$0xff pattern:$0x75316420] }
  0x62   :  { %136 = vrot.lane.b32.xlu1 %v135_v18, %s242_s18  ;;  %145 = vst [vmem:[#allocation1] ss:$2 sm:$0xff] %v269_v0 }
  0x69   :  { %v147_v19 = vld.sshfl [vmem:[#allocation1 + $0x8] sm:$0xff pattern:$0x75316420]  ;;  %v146_v20 = vld.sshfl [vmem:[#allocation1] sm:$0xff pattern:$0x75316420] }
  0x6a   :  { %150 = vrot.lane.b32.xlu0 %v147_v19, %s243_s19  ;;  %155 = vst [vmem:[#allocation1] ss:$2 sm:$0xff] %v269_v0  ;;  %148 = vrot.lane.b32.xlu2 %v146_v20, %s243_s19 }
  0x71   :  { %v156_v21 = vld.sshfl [vmem:[#allocation1] sm:$0xff pattern:$0x75316420] }
  0x72   :  { %157 = vrot.lane.b32.xlu1 %v156_v21, %s243_s19  ;;  %166 = vst [vmem:[#allocation1] ss:$2 sm:$0xff] %v269_v0 }
  0x74   :  { %v43_v27 = vpop.permute.xlu2 %42 }
  0x79   :  { %v168_v22 = vld.sshfl [vmem:[#allocation1 + $0x8] sm:$0xff pattern:$0x75316420]  ;;  %v167_v23 = vld.sshfl [vmem:[#allocation1] sm:$0xff pattern:$0x75316420] }
  0x7a   :  { %171 = vrot.lane.b32.xlu0 %v168_v22, %s244_s20  ;;  %176 = vst [vmem:[#allocation1] ss:$2 sm:$0xff] %v269_v0  ;;  %169 = vrot.lane.b32.xlu2 %v167_v23, %s244_s20 }
  0x7c   :  { %v21_v25 = vpop.permute.xlu1 %20  ;;  %v51_v30 = vpop.permute.xlu2 %50 }
  0x81   :  { %v177_v24 = vld.sshfl [vmem:[#allocation1] sm:$0xff pattern:$0x75316420] }
  0x82   :  { %178 = vrot.lane.b32.xlu1 %v177_v24, %s244_s20 }
  0x84   :  { %v27_v26 = vpop.permute.xlu0 %26  ;;  %v64_v33 = vpop.permute.xlu2 %63 }
  0x85   :  { %v33_v42 = vsel %vm30_vm0, %v21_v25, %v27_v26 }
  0x8c   :  { %v29_v28 = vpop.permute.xlu0 %28 }
  0x8d   :  { %v31_v39 = vsel %vm30_vm0, %v27_v26, %v29_v28 }
  0x8e   :  { %v35_v41 = vrot.slane %v31_v39, 4 }
  0x90   :  { %v37_v45 = vsel %vm36_vm2, %v33_v42, %v35_v41 }
  0x91   :  { %v39_v52 = vadd.f32 %v37_v45, %v16_v44 }
  0x94   :  { %v49_v29 = vpop.permute.xlu1 %48  ;;  %v85_v36 = vpop.permute.xlu2 %84 }
  0x95   :  { %v53_v43 = vsel %vm52_vm1, %v49_v29, %v51_v30  ;;  %v55_v49 = vsel %vm52_vm1, %v43_v27, %v49_v29  ;;  %v193_v30 = vstv %s191_s23 }
  0x96   :  { %v57_v46 = vrot.slane %v53_v43, 4 }
  0x98   :  { %v58_v53 = vsel %vm36_vm2, %v55_v49, %v57_v46 }
  0x99   :  { %v60_v57 = vadd.f32 %v58_v53, %v39_v52 }
  0xa4   :  { %v72_v31 = vpop.permute.xlu1 %71  ;;  %v70_v32 = vpop.permute.xlu0 %69 }
  0xa5   :  { %v107_v40 = vpop.permute.xlu2 %106  ;;  %v74_v50 = vsel %vm73_vm3, %v70_v32, %v72_v31  ;;  %v76_v55 = vsel %vm73_vm3, %v64_v33, %v70_v32 }
  0xa6   :  { %v78_v54 = vrot.slane %v74_v50, 4 }
  0xa8   :  { %v79_v59 = vsel %vm36_vm2, %v76_v55, %v78_v54 }
  0xa9   :  { %v81_v4 = vadd.f32 %v79_v59, %v60_v57 }
  0xb4   :  { %v93_v34 = vpop.permute.xlu1 %92  ;;  %v91_v35 = vpop.permute.xlu0 %90 }
  0xb5   :  { %v128_v51 = vpop.permute.xlu2 %127  ;;  %v95_v56 = vsel %vm94_vm4, %v91_v35, %v93_v34  ;;  %v97_v63 = vsel %vm94_vm4, %v85_v36, %v91_v35  ;;  %v198_v36 = vld [vmem:[%s316_s2] sm:$0x3] }
  0xb6   :  { %v99_v60 = vrot.slane %v95_v56, 4  ;;  %vm199_vm9 = vcmp.gt.f32.partialorder %v198_v36, 0.5 }
  0xb8   :  { %v100_v7 = vsel %vm36_vm2, %v97_v63, %v99_v60 }
  0xb9   :  { %v102_v12 = vadd.f32 %v100_v7, %v81_v4 }
  0xbc   :  { %v109_v37 = vpop.permute.xlu0 %108 }
  0xbd   :  { %v111_v5 = vsel %vm110_vm5, %v107_v40, %v109_v37 }
  0xc4   :  { %v116_v38 = vpop.permute.xlu1 %115  ;;  %v149_v3 = vpop.permute.xlu2 %148 }
  0xc5   :  { %v118_v58 = vsel %vm110_vm5, %v109_v37, %v116_v38  ;;  %v245_v37 = vmov 0  }
  0xc6   :  { %v120_v2 = vrot.slane %v118_v58, 4  ;;  %v200_v38 = vsel %vm199_vm9, 1, %v245_v37 }
  0xc7   :  { %v202_v41 = vperm.slane %v200_v38, 1  ;;  %v201_v42 = vperm.slane %v200_v38, 0 }
  0xc8   :  { %v121_v10 = vsel %vm36_vm2, %v111_v5, %v120_v2 }
  0xc9   :  { %v123_v16 = vadd.f32 %v121_v10, %v102_v12  ;;  %vm204_vm10 = vcmp.eq.s32.totalorder %v202_v41, 1  ;;  %vm203_vm11 = vcmp.eq.s32.totalorder %v201_v42, 1 }
  0xcc   :  { %v130_v47 = vpop.permute.xlu0 %129 }
  0xcd   :  { %v132_v9 = vsel %vm131_vm6, %v128_v51, %v130_v47 }
  0xd4   :  { %v137_v48 = vpop.permute.xlu1 %136  ;;  %v170_v18 = vpop.permute.xlu2 %169 }
  0xd5   :  { %v139_v1 = vsel %vm131_vm6, %v130_v47, %v137_v48 }
  0xd6   :  { %v141_v8 = vrot.slane %v139_v1, 4 }
  0xd8   :  { %v142_v14 = vsel %vm36_vm2, %v132_v9, %v141_v8 }
  0xd9   :  { %v144_v20 = vadd.f32 %v142_v14, %v123_v16 }
  0xdc   :  { %v151_v61 = vpop.permute.xlu0 %150 }
  0xdd   :  { %v153_v13 = vsel %vm152_vm7, %v149_v3, %v151_v61 }
  0xe4   :  { %v158_v62 = vpop.permute.xlu1 %157 }
  0xe5   :  { %v160_v6 = vsel %vm152_vm7, %v151_v61, %v158_v62 }
  0xe6   :  { %v162_v11 = vrot.slane %v160_v6, 4 }
  0xe8   :  { %v163_v17 = vsel %vm36_vm2, %v153_v13, %v162_v11 }
  0xe9   :  { %v165_v23 = vadd.f32 %v163_v17, %v144_v20 }
  0xec   :  { %v172_v15 = vpop.permute.xlu0 %171 }
  0xed   :  { %v174_v24 = vsel %vm173_vm8, %v170_v18, %v172_v15 }
  0xf4   :  { %v179_v19 = vpop.permute.xlu1 %178 }
  0xf5   :  { %v181_v21 = vsel %vm173_vm8, %v172_v15, %v179_v19 }
  0xf6   :  { %v183_v22 = vrot.slane %v181_v21, 4 }
  0xf8   :  { %v184_v25 = vsel %vm36_vm2, %v174_v24, %v183_v22 }
  0xf9   :  { %v186_v26 = vadd.f32 %v184_v25, %v165_v23 }
  0xfb   :  { %v187_v27 = vmul.f32 0.07692308, %v186_v26 }
  0xfd   :  { %v188_v28 = vmax.f32 %v187_v27, 0.0 }
  0xff   :  { %v189_v29 = vmin.f32 %v188_v28, 1.0 }
 0x101   :  { %v192_v31 = vsub.f32 %v269_v0, %v189_v29 }
 0x103   :  { %v194_v32 = vmul.f32 %v193_v30, %v192_v31 }
 0x105   :  { %v195_v33 = vadd.f32 %v194_v32, %v189_v29 }
 0x107   :  { %v196_v34 = vmax.f32 %v195_v33, 0.0 }
 0x109   :  { %v197_v35 = vmin.f32 %v196_v34, 1.0 }
 0x10b   :  { %206 = vst [vmem:[#allocation1] ss:$2 sm:$0xff] %v197_v35 }
 0x112   :  { %v207_v39 = vld.sshfl [vmem:[#allocation1] sm:$0xff pattern:$0x75316420]  ;;  %v208_v40 = vld.sshfl [vmem:[#allocation1 + $0x8] sm:$0xff pattern:$0x75316420] }
 0x113   :  { %211 = vst [vmem:[#allocation1] ss:$2 sm:$0xff] %v269_v0 }
 0x11a   :  { %v212_v43 = vld.sshfl [vmem:[#allocation1] sm:$0xff pattern:$0x75316420]  ;;  %v213_v44 = vld.sshfl [vmem:[#allocation1 + $0x8] sm:$0xff pattern:$0x75316420] }
 0x11b   :  { %v217_v45 = vsel %vm204_vm10, %v208_v40, %v213_v44  ;;  %v216_v47 = vsel %vm203_vm11, %v207_v39, %v212_v43 }
 0x11c   :  { %v220_v46 = vrot.slane %v217_v45, 4 }
 0x11e   :  { %v221_v48 = vsel %vm36_vm2, %v216_v47, %v220_v46 }
 0x11f   :  { %223 = vst [vmem:[%s317_s3] sm:$0x77] %v221_v48 }

// kernel: branch_6_fun.1
= control target key start
LH: loop header
LB: loop body
LE: loop exit
PB: predicated region body
PF: predicated region fallthrough
CT: control target
= control target key end

     0   :  { %s31_s0 = inlined_call_operand.vmem [shape: f32[3,256], index: 0, kind: input, shape index: {}]   ;;  %s32_s1 = inlined_call_operand.vmem [shape: f32[3,256], index: 1, kind: output, shape index: {}]  }
   0x1   :  { %v8_v0 = vld [vmem:[%s31_s0] sm:$0x77] }
   0x2   :  { %v9_v1 = vsub.f32 1.0, %v8_v0 }
   0x4   :  { %10 = vst [vmem:[%s32_s1] sm:$0x77] %v9_v1 }

// kernel: branch_5_fun.1
= control target key start
LH: loop header
LB: loop body
LE: loop exit
PB: predicated region body
PF: predicated region fallthrough
CT: control target
= control target key end

     0   :  { %s47_s0 = inlined_call_operand.<no memory space> [shape: f32[1], index: 0, kind: input, shape index: {}]   ;;  %s48_s1 = inlined_call_operand.vmem [shape: f32[3,256], index: 1, kind: input, shape index: {}]   ;;  %s49_s2 = inlined_call_operand.vmem [shape: f32[3,256], index: 2, kind: output, shape index: {}]  }
   0x1   :  { %v12_v0 = vld [vmem:[%s48_s1] sm:$0x77]  ;;  %v14_v1 = vstv %s47_s0 }
   0x2   :  { %vm15_vm0 = vcmp.ge.f32.partialorder %v12_v0, %v14_v1  ;;  %v16_v2 = vsub.f32 1.0, %v12_v0 }
   0x4   :  { %v17_v3 = vsel %vm15_vm0, %v16_v2, %v12_v0 }
   0x5   :  { %18 = vst [vmem:[%s49_s2] sm:$0x77] %v17_v3 }

// kernel: branch_7_fun.1
= control target key start
LH: loop header
LB: loop body
LE: loop exit
PB: predicated region body
PF: predicated region fallthrough
CT: control target
= control target key end

     0   :  { %s60_s0 = inlined_call_operand.<no memory space> [shape: f32[1], index: 0, kind: input, shape index: {}]   ;;  %s61_s1 = inlined_call_operand.vmem [shape: f32[3,256], index: 1, kind: input, shape index: {}]   ;;  %s62_s2 = inlined_call_operand.vmem [shape: f32[3,256], index: 2, kind: input, shape index: {}]   ;;  %s63_s3 = inlined_call_operand.vmem [shape: f32[3,256], index: 3, kind: output, shape index: {}]  }
   0x1   :  { %v15_v0 = vld [vmem:[%s61_s1] sm:$0x77]  ;;  %v18_v2 = vstv %s60_s0 }
   0x2   :  { %v17_v1 = vld [vmem:[%s62_s2] sm:$0x77] }
   0x3   :  { %v19_v3 = vmul.f32 %v18_v2, %v17_v1 }
   0x5   :  { %v20_v4 = vadd.f32 %v19_v3, %v15_v0 }
   0x7   :  { %v21_v5 = vmax.f32 %v20_v4, 0.0 }
   0x9   :  { %v22_v6 = vmin.f32 %v21_v5, 1.0 }
   0xb   :  { %23 = vst [vmem:[%s63_s3] sm:$0x77] %v22_v6 }

</bundles_post_ra>
